<compile_context>
chip_gen: v6e
topology: v6e:2x2x1
jax: 0.10.0
libtpu: 0.0.40
codegen_flags: <defaults>
</compile_context>

<pallas_src>
import functools

import jax
import jax.numpy as jnp
from jax.experimental import pallas as pl
from jax.experimental.pallas import tpu as pltpu

LANES = 128
SUBLANES = 8
MAX_BLOCK_ROWS = 8192        # 8192 x 128 f32 = 4 MiB per input tile
MIN_BLOCK_ROWS = 512         # keep per-step DMA >= 256 KiB (amortize ~0.35 us/step)
TARGET_MIN_BLOCKS = 4        # give both v7x TensorCores work, each double-buffered
SMALL_INPUT_BYTES = 1 << 20  # below this, fused XLA mean(|x-c|) is as fast or faster
VMEM_LIMIT_BYTES = 32 << 20  # = v6e/v7x scoped default; raises v5e's 16 MiB default


def _round_up(x, m):
    return ((x + m - 1) // m) * m


def _l1_partial_kernel(x_ref, c_ref, o_ref, *, block_rows, total_rows, need_mask):
    """One grid step: partial sums of |x - c| over a (block_rows, 128) tile,
    written as an (8, 128) f32 slab (unmasked, full-vreg stores)."""

    def partial_slab(d):
        # (block_rows, 128) -> (block_rows//8, 8, 128) is (8,128)-tile aligned,
        # so the reshape is free and the axis-0 sum is pure full-vreg VALU adds.
        return jnp.sum(d.reshape(block_rows // SUBLANES, SUBLANES, LANES), axis=0)

    d = jnp.abs(x_ref[...].astype(jnp.float32) - c_ref[...].astype(jnp.float32))

    if need_mask:
        pid = pl.program_id(0)
        last = pl.num_programs(0) - 1

        # Only the last (ragged) block pays for the iota/compare/select.
        @pl.when(pid == last)
        def _():
            row0 = pid * block_rows
            row_ids = row0 + jax.lax.broadcasted_iota(jnp.int32, d.shape, 0)
            o_ref[...] = partial_slab(jnp.where(row_ids < total_rows, d, 0.0))

        @pl.when(pid != last)
        def _():
            o_ref[...] = partial_slab(d)
    else:
        o_ref[...] = partial_slab(d)


def custom_l1_loss(x_hat, code):
    """Mean absolute error between x_hat and code (NCHW, YUV channels)."""
    assert x_hat.shape == code.shape
    nb_values = x_hat.size  # == Y.numel() + U.numel() + V.numel()

    # Small-input fast path: launch + separate wrapper-reduce would dominate.
    if x_hat.nbytes + code.nbytes < SMALL_INPUT_BYTES:
        diff = x_hat.astype(jnp.float32) - code.astype(jnp.float32)
        return jnp.sum(jnp.abs(diff)) / jnp.float32(nb_values)

    xf = x_hat.reshape(-1)
    cf = code.reshape(-1)
    rows = nb_values // LANES
    main = rows * LANES

    if main == nb_values:
        # Common case: free bitcast reshape, no data movement, native dtype.
        x2d = xf.reshape(rows, LANES)
        c2d = cf.reshape(rows, LANES)
        tail = None
    else:
        # Rare path: keep the lane-dense main slab and handle the <128-element
        # remainder with plain jnp (added to the partial sum below).  This
        # avoids the old full-tensor pad + padded write.
        x2d = xf[:main].reshape(rows, LANES)
        c2d = cf[:main].reshape(rows, LANES)
        tail = (xf[main:], cf[main:])

    # Tile sizing: biggest tile up to 8192 rows, multiple of 8 sublanes, but
    # clamped so medium inputs still produce >= TARGET_MIN_BLOCKS grid steps
    # (2-TC sharding on v7x via the "parallel" axis) and each step moves at
    # least MIN_BLOCK_ROWS rows to amortize the fixed per-step overhead.
    rows8 = _round_up(rows, SUBLANES)
    block_rows = _round_up(pl.cdiv(rows, TARGET_MIN_BLOCKS), SUBLANES)
    block_rows = max(MIN_BLOCK_ROWS, min(MAX_BLOCK_ROWS, block_rows))
    block_rows = min(block_rows, rows8)
    num_blocks = pl.cdiv(rows, block_rows)
    need_mask = (rows % block_rows) != 0

    kernel = functools.partial(
        _l1_partial_kernel,
        block_rows=block_rows,
        total_rows=rows,
        need_mask=need_mask,
    )

    out_bytes = num_blocks * SUBLANES * LANES * 4
    cost = pl.CostEstimate(
        flops=3 * main,  # sub + abs + accumulate per element
        transcendentals=0,
        bytes_accessed=x2d.nbytes + c2d.nbytes + out_bytes,
    )

    partials = pl.pallas_call(
        kernel,
        out_shape=jax.ShapeDtypeStruct((num_blocks * SUBLANES, LANES), jnp.float32),
        grid=(num_blocks,),
        in_specs=[
            pl.BlockSpec((block_rows, LANES), lambda i: (i, 0)),
            pl.BlockSpec((block_rows, LANES), lambda i: (i, 0)),
        ],
        out_specs=pl.BlockSpec((SUBLANES, LANES), lambda i: (i, 0)),
        compiler_params=pltpu.CompilerParams(
            dimension_semantics=("parallel",),
            vmem_limit_bytes=VMEM_LIMIT_BYTES,
        ),
        cost_estimate=cost,
    )(x2d, c2d)

    total = jnp.sum(partials)
    if tail is not None:
        xt, ct = tail
        total = total + jnp.sum(jnp.abs(xt.astype(jnp.float32) - ct.astype(jnp.float32)))
    return total / jnp.float32(nb_values)


if __name__ == "__main__":
    key = jax.random.PRNGKey(0)

    def check(shape, k):
        k1, k2 = jax.random.split(k)
        x_hat = jax.random.uniform(k1, shape, dtype=jnp.float32)
        code = jax.random.uniform(k2, shape, dtype=jnp.float32)
        loss = jax.block_until_ready(custom_l1_loss(x_hat, code))
        ref = jnp.mean(jnp.abs(x_hat - code))  # pure-JAX reference
        assert jnp.allclose(loss, ref, rtol=1e-5, atol=1e-6), (shape, loss, ref)

    ks = jax.random.split(key, 3)
    # Tiny input consistent with the module (small-input fast path).
    check((2, 3, 16, 16), ks[0])
    # Lane-aligned element count -> Pallas kernel path (no mask, no tail).
    check((2, 3, 256, 256), ks[1])
    # Element count not a multiple of 128 -> masked last block + jnp tail path.
    check((2, 3, 250, 250), ks[2])

    print("KERNEL_OK")
</pallas_src>

<mosaic_0001>
module attributes {stable_mosaic.version = 11 : i64} {
  func.func @_l1_partial_kernel(%arg0: i32, %arg1: memref<768x128xf32, #tpu.memory_space<vmem>>, %arg2: memref<768x128xf32, #tpu.memory_space<vmem>>, %arg3: memref<8x128xf32, #tpu.memory_space<vmem>>) attributes {dimension_semantics = [#tpu.dimension_semantics<parallel>], iteration_bounds = array<i64: 4>, scalar_prefetch = 0 : i64, scratch_operands = 0 : i64, tpu.core_type = #tpu.core_type<tc>, window_params = [{transform_indices = @transform_0, window_bounds = array<i64: 768, 128>}, {transform_indices = @transform_1, window_bounds = array<i64: 768, 128>}, {transform_indices = @transform_2, window_bounds = array<i64: 8, 128>}]} {
    %c0 = arith.constant 0 : index
    %c0_0 = arith.constant 0 : index
    %0 = vector.load %arg1[%c0, %c0_0] : memref<768x128xf32, #tpu.memory_space<vmem>>, vector<768x128xf32>
    %c0_1 = arith.constant 0 : index
    %c0_2 = arith.constant 0 : index
    %1 = vector.load %arg2[%c0_1, %c0_2] : memref<768x128xf32, #tpu.memory_space<vmem>>, vector<768x128xf32>
    %2 = arith.subf %0, %1 : vector<768x128xf32>
    %3 = math.absf %2 : vector<768x128xf32>
    %4 = vector.shape_cast %3 : vector<768x128xf32> to vector<96x8x128xf32>
    %cst = arith.constant dense<0.000000e+00> : vector<8x128xf32>
    %5 = vector.multi_reduction <add>, %4, %cst [0] : vector<96x8x128xf32> to vector<8x128xf32>
    %c0_3 = arith.constant 0 : index
    %c0_4 = arith.constant 0 : index
    %6 = vector.load %arg3[%c0_3, %c0_4] : memref<8x128xf32, #tpu.memory_space<vmem>>, vector<8x128xf32>
    tpu.vector_store %arg3[%c0_3, %c0_4], %5 {strides = array<i32>} : memref<8x128xf32, #tpu.memory_space<vmem>>, vector<8x128xf32>,
    return
  }
  func.func @transform_0(%arg0: i32) -> (i32, i32) {
    %c0_i32 = arith.constant 0 : i32
    %c0_i32_0 = arith.constant 0 : i32
    return %arg0, %c0_i32 : i32, i32
  }
  func.func @transform_1(%arg0: i32) -> (i32, i32) {
    %c0_i32 = arith.constant 0 : i32
    %c0_i32_0 = arith.constant 0 : i32
    return %arg0, %c0_i32 : i32, i32
  }
  func.func @transform_2(%arg0: i32) -> (i32, i32) {
    %c0_i32 = arith.constant 0 : i32
    %c0_i32_0 = arith.constant 0 : i32
    return %arg0, %c0_i32 : i32, i32
  }
}

</mosaic_0001>

<bundles_post_ra>
// kernel: tpu_custom_call.1
= control target key start
LH: loop header
LB: loop body
LE: loop exit
PB: predicated region body
PF: predicated region fallthrough
CT: control target
= control target key end

     0   :  { %7 = vsyncpa [#allocation3], 0  ;;  %s1399_s0 = inlined_call_operand.hbm [shape: f32[3072,128], index: 0, kind: input, shape index: {}]   ;;  %s1400_s1 = inlined_call_operand.hbm [shape: f32[3072,128], index: 1, kind: input, shape index: {}]   ;;  %s1401_s2 = inlined_call_operand.hbm [shape: f32[32,128], index: 2, kind: output, shape index: {}]  }
   0x1   :  { %9 = vsyncpa [#allocation3 + $0x1], 0 }
   0x2   :  { %10 = vsyncpa [#allocation6], 0 }
   0x3   :  { %12 = vsyncpa [#allocation6 + $0x1], 0 }
   0x4   :  { %13 = vsyncpa [#allocation4], 0 }
   0x5   :  { %15 = vsyncpa [#allocation4 + $0x1], 0  ;;  %s1006_s9 = smov 0   ;;  %s1008_s10 = smov 0  }
   0x6   :  { %s1010_s11 = smov 0   ;;  %s1012_s12 = smov 0  }
   0x7 LB: > { %s1027_s13 = sadd.s32 4294967295, %s984_s12   ;;  %s791_s14 = sadd.s32 4294967294, %s984_s12   ;;  %s984_s12 = sphi %s1012_s12, %s1415_s12   ;;  %s980_s11 = sphi %s1010_s11, %s1414_s11   ;;  %s976_s10 = sphi %s1008_s10, %s1413_s10   ;;  %s972_s9 = sphi %s1006_s9, %s1412_s9  }
   0x8   : > { %s1031_s15 = sadd.s32 1, %s984_s12   ;;  %s28_s16 = sadd.s32 1, %s980_s11 }
   0x9   : > { %s25_s17 = ssub.s32 %s984_s12, %s1031_s15  ;;  %p35_p0 = scmp.ne.s32.totalorder %s980_s11, %s976_s10 }
   0xa   : > { %p26_p1 = scmp.eq.s32.totalorder %s25_s17, 0  ;;  %p36_p2 = scmp.eq.s32.totalorder %s984_s12, 0 }
   0xb   : > { %p41_p3 = scmp.ne.s32.totalorder %s976_s10, %s972_s9  ;;  %p42_p4 = scmp.eq.s32.totalorder %s1027_s13, 0 }
   0xc   : > { %s1043_s18 = scalar_select %p26_p1, %s980_s11, %s28_s16  }
   0xd   : > { %p37_p5 = por %p36_p2, %p35_p0  ;;  %p1045_p6 = por %p42_p4, %p41_p3 }
   0xe   : > { %p91_p7 = scmp.eq.s32.totalorder %s1027_s13, 3  ;;  %p97_p8 = scmp.eq.s32.totalorder %s791_s14, 3 }
   0xf   : > { %s1404_s19 = scalar_select %p1045_p6, 1, 0 }
  0x10   : > { %p824_p9 = scmp.lt.s32.totalorder %s984_s12, 4  ;;  %p1051_p10 = por %p91_p7, %p35_p0 }
  0x11   : > { %p1055_p11 = por %p97_p8, %p41_p3  ;;  %s1060_s22 = sand.u32 1, %s980_s11  }
  0x12   : > { %s1405_s20 = scalar_select %p1051_p10, 1, 0 }
  0x13   : > { %s1406_s21 = scalar_select %p1055_p11, 1, 0 }
  0x14   : > { %s802_s23 = smul.u32 12288, %s984_s12  ;;  %p1071_p12 = pnand %p824_p9, %p37_p5 }
  0x15   : > { %s804_s24 = smul.u32 768, %s1060_s22  ;;  %s118_s3 = scalar_lea.sflag [#allocation3], %s1060_s22 }
  0x16   : > { %s1069_s27 = scalar_lea.hbm %s1399_s0, %s802_s23  ;;  %p862_p0 = pneg %p1071_p12 }
  0x17   : > { %s121_s29 = scalar_lea.vmem [#allocation2], %s804_s24  ;;  %s860_s4 = scalar_lea.hbm %s1069_s27, 12288 }
  0x18   : > { %s128_s30 = sshll.u32 %s121_s29, 4  ;;  %p861_p13 = scmp.ne.s32.totalorder %s1069_s27, %s860_s4  ;;  %s1077_s30 = int_to_ptr.vmem [resolvable:$true] %s128_s30 }
  0x19   : > { %s865_s7 = scalar_lea.hbm %s1399_s0, 49152  ;;  %p866_p3 = scmp.lt.s32.totalorder %s1069_s27, %s1399_s0 }
  0x1a   : > { %p863_p1 = pnand %p862_p0, %p861_p13  ;;  %p867_p4 = scmp.lt.s32.totalorder %s865_s7, %s860_s4 }
  0x1c   : > { %p864_p2 = pneg %p863_p1  ;;  %p868_p5 = por %p867_p4, %p866_p3 }
  0x1e   : > { %p869_p7 = pnand %p868_p5, %p864_p2 }
  0x20   : > { %872 = shalt.err (!%p869_p7)
}
  0x21   : > { %s873_s16 = scalar_lea.vmem %s1077_s30, 12288  ;;  %s986_s17 = smov [#allocation2]  }
  0x22   : > { %p874_p8 = scmp.ne.s32.totalorder %s1077_s30, %s873_s16  ;;  %s878_s25 = sshll.u32 %s986_s17, 4  ;;  %s879_s25 = int_to_ptr.vmem [resolvable:$false] %s878_s25 }
  0x23   : > { %s880_s26 = scalar_lea.vmem %s879_s25, 24576  ;;  %p881_p1 = scmp.lt.s32.totalorder %s1077_s30, %s879_s25 }
  0x24   : > { %p876_p9 = pnand %p874_p8, %p862_p0  ;;  %p882_p11 = scmp.lt.s32.totalorder %s880_s26, %s873_s16 }
  0x26   : > { %p877_p13 = pneg %p876_p9  ;;  %p883_p10 = por %p882_p11, %p881_p1 }
  0x28   : > { %p884_p3 = pnand %p883_p10, %p877_p13 }
  0x2a   : > { %887 = shalt.err (!%p884_p3)
}
  0x2b   : > { %s987_s29 = smov 128   ;;  %s988_s4 = smov 8  }
  0x2c   : > { %816 = dma.hbm_to_vmem [thread:$0]  (!%p1071_p12), %s1069_s27, 12288, %s1077_s30, %s118_s3, %s987_s29, %s987_s29, %s988_s4  }
  0x2d   : > { %p796_p10 = scmp.ge.s32.totalorder %s984_s12, 1  ;;  %p157_p11 = scmp.lt.s32.totalorder %s984_s12, 5 }
  0x2e   : > { %s1120_s8 = scalar_lea.hbm %s1400_s1, %s802_s23  ;;  %s142_s14 = scalar_lea.vmem [#allocation5], %s804_s24 }
  0x2f   : > { %p1111_p2 = pnand %p796_p10, %p157_p11  ;;  %s149_s16 = sshll.u32 %s142_s14, 4  ;;  %s1124_s16 = int_to_ptr.vmem [resolvable:$true] %s149_s16 }
  0x30   : > { %s139_s27 = scalar_lea.sflag [#allocation6], %s1060_s22  ;;  %s888_s30 = scalar_lea.hbm %s1120_s8, 12288 }
  0x31   : > { %p889_p4 = scmp.ne.s32.totalorder %s1120_s8, %s888_s30  ;;  %s893_s23 = scalar_lea.hbm %s1400_s1, 49152 }
  0x32   : > { %p894_p8 = scmp.lt.s32.totalorder %s1120_s8, %s1400_s1  ;;  %p895_p9 = scmp.lt.s32.totalorder %s893_s23, %s888_s30 }
  0x33   : > { %p891_p5 = pnand %p889_p4, %p862_p0 }
  0x34   : > { %p896_p13 = por %p895_p9, %p894_p8 }
  0x35   : > { %p892_p7 = pneg %p891_p5 }
  0x37   : > { %p897_p1 = pnand %p896_p13, %p892_p7 }
  0x39   : > { %900 = shalt.err (!%p897_p1)
}
  0x3a   : > { %s901_s22 = scalar_lea.vmem %s1124_s16, 12288  ;;  %s989_s24 = smov [#allocation5]  }
  0x3b   : > { %p902_p3 = scmp.ne.s32.totalorder %s1124_s16, %s901_s22  ;;  %s906_s6 = sshll.u32 %s989_s24, 4  ;;  %s907_s6 = int_to_ptr.vmem [resolvable:$false] %s906_s6 }
  0x3c   : > { %s908_s7 = scalar_lea.vmem %s907_s6, 24576  ;;  %p909_p4 = scmp.lt.s32.totalorder %s1124_s16, %s907_s6 }
  0x3d   : > { %p904_p10 = pnand %p902_p3, %p862_p0  ;;  %p910_p5 = scmp.lt.s32.totalorder %s908_s7, %s901_s22 }
  0x3f   : > { %p905_p11 = pneg %p904_p10  ;;  %p911_p6 = por %p910_p5, %p909_p4 }
  0x41   : > { %p912_p8 = pnand %p911_p6, %p905_p11 }
  0x43   : > { %915 = shalt.err (!%p912_p8)
}
  0x44   : > { %819 = dma.hbm_to_vmem [thread:$0]  (!%p1071_p12), %s1120_s8, 12288, %s1124_s16, %s139_s27, %s987_s29, %s987_s29, %s988_s4  }
  0x45   : > { %161 = sbr.rel (%p1111_p2) target bundleno = 286 (0x11e), region = 28  ;;  %s1155_s14 = sand.u32 (!%p1111_p2), 1, %s976_s10  }
  0x46   : > { %s806_s30 = smul.u32 (!%p1111_p2), 768, %s1155_s14  ;;  %s164_s3 = scalar_lea.sflag (!%p1111_p2), [#allocation3], %s1155_s14 }
  0x47   : > { %p1409_p6 = scmp.ne.s32.totalorder (!%p1111_p2), %s1404_s19, 0 }
  0x48   : > { %s1159_s17 = scalar_lea.vmem (!%p1111_p2), [#allocation2], %s806_s30 }
  0x4a   : > { %959 = dma.done.wait (%p1409_p6), %s164_s3, 12288  }
  0x4b   : > { %961 = vsyncadd (%p1409_p6), %s164_s3, 4294955008  ;;  %s173_s28 = scalar_lea.sflag [#allocation6], %s1155_s14  ;;  %s1166_s29 = scalar_lea.vmem [#allocation5], %s806_s30 }
  0x4c   : > { %963 = dma.done.wait (%p1409_p6), %s173_s28, 12288  }
  0x4d   : > { %965 = vsyncadd (%p1409_p6), %s173_s28, 4294955008  ;;  %v204_v0 = vld [vmem:[%s1159_s17] sm:$0xff]  ;;  %v205_v1 = vld [vmem:[%s1159_s17 + $0x8] sm:$0xff]  ;;  %s797_s19 = sshll.u32 %s1155_s14, 3  ;;  %s799_s4 = sshll.u32 %s1027_s13, 7 }
  0x4e   : > { %v300_v2 = vld [vmem:[%s1166_s29] sm:$0xff]  ;;  %v301_v3 = vld [vmem:[%s1166_s29 + $0x8] sm:$0xff]  ;;  %v206_v4 = vld [vmem:[%s1159_s17 + $0x10] sm:$0xff]  ;;  %s201_s5 = scalar_lea.vmem [#allocation7], %s797_s19  ;;  %s696_s23 = scalar_lea.hbm %s1401_s2, %s799_s4 }
  0x4f   : > { %v302_v5 = vld [vmem:[%s1166_s29 + $0x10] sm:$0xff]  ;;  %v396_v6 = vsub.f32 %v204_v0, %v300_v2  ;;  %v397_v7 = vsub.f32 %v205_v1, %v301_v3  ;;  %v207_v8 = vld [vmem:[%s1159_s17 + $0x18] sm:$0xff]  ;;  %v208_v11 = vld [vmem:[%s1159_s17 + $0x20] sm:$0xff]  ;;  %s698_s8 = sshll.u32 %s201_s5, 4  ;;  %s685_s25 = scalar_lea.sflag [#allocation4], %s1155_s14  ;;  %s699_s8 = int_to_ptr.vmem [resolvable:$true] %s698_s8 }
  0x50   : > { %v303_v9 = vld [vmem:[%s1166_s29 + $0x18] sm:$0xff]  ;;  %v398_v10 = vsub.f32 %v206_v4, %v302_v5  ;;  %v304_v12 = vld [vmem:[%s1166_s29 + $0x20] sm:$0xff]  ;;  %v209_v16 = vld [vmem:[%s1159_s17 + $0x28] sm:$0xff]  ;;  %s916_s26 = scalar_lea.vmem %s699_s8, 128  ;;  %p1410_p0 = scmp.ne.s32.totalorder %s1405_s20, 0 }
  0x51   : > { %v399_v13 = vsub.f32 %v207_v8, %v303_v9  ;;  %v492_v14 = vand.u32 2147483647, %v396_v6  ;;  %v493_v15 = vand.u32 2147483647, %v397_v7  ;;  %v305_v17 = vld [vmem:[%s1166_s29 + $0x28] sm:$0xff]  ;;  %v400_v18 = vsub.f32 %v208_v11, %v304_v12  ;;  %v210_v20 = vld [vmem:[%s1159_s17 + $0x30] sm:$0xff]  ;;  %p917_p12 = scmp.ne.s32.totalorder %s699_s8, %s916_s26 }
  0x52   : > { %v494_v19 = vand.u32 2147483647, %v398_v10  ;;  %v306_v21 = vld [vmem:[%s1166_s29 + $0x30] sm:$0xff]  ;;  %v401_v22 = vsub.f32 %v209_v16, %v305_v17  ;;  %v211_v25 = vld [vmem:[%s1159_s17 + $0x38] sm:$0xff]  ;;  %v212_v30 = vld [vmem:[%s1159_s17 + $0x40] sm:$0xff]  ;;  %s990_s22 = smov [#allocation7]  }
  0x53   : > { %v495_v23 = vand.u32 2147483647, %v399_v13  ;;  %v588_v24 = vadd.f32 %v493_v15, %v492_v14  ;;  %v307_v26 = vld [vmem:[%s1166_s29 + $0x38] sm:$0xff]  ;;  %v402_v27 = vsub.f32 %v210_v20, %v306_v21  ;;  %v496_v28 = vand.u32 2147483647, %v400_v18  ;;  %v308_v31 = vld [vmem:[%s1166_s29 + $0x40] sm:$0xff]  ;;  %p918_p2 = pnand %p917_p12, %p1410_p0 }
  0x54   : > { %v403_v32 = vsub.f32 %v211_v25, %v307_v26  ;;  %v497_v33 = vand.u32 2147483647, %v401_v22  ;;  %v213_v35 = vld [vmem:[%s1159_s17 + $0x48] sm:$0xff]  ;;  %v404_v37 = vsub.f32 %v212_v30, %v308_v31  ;;  %v214_v40 = vld [vmem:[%s1159_s17 + $0x50] sm:$0xff]  ;;  %v215_v45 = vld [vmem:[%s1159_s17 + $0x58] sm:$0xff]  ;;  %s920_s24 = sshll.u32 %s990_s22, 4  ;;  %s921_s24 = int_to_ptr.vmem [resolvable:$false] %s920_s24 }
  0x55   : > { %v589_v29 = vadd.f32 %v588_v24, %v494_v19  ;;  %v309_v36 = vld [vmem:[%s1166_s29 + $0x48] sm:$0xff]  ;;  %v498_v38 = vand.u32 2147483647, %v402_v27  ;;  %v310_v41 = vld [vmem:[%s1166_s29 + $0x50] sm:$0xff]  ;;  %v311_v46 = vld [vmem:[%s1166_s29 + $0x58] sm:$0xff]  ;;  %p919_p7 = pneg %p918_p2  ;;  %s922_s13 = scalar_lea.vmem %s921_s24, 256 }
  0x56   : > { %v405_v42 = vsub.f32 %v213_v35, %v309_v36  ;;  %v499_v43 = vand.u32 2147483647, %v403_v32  ;;  %v406_v47 = vsub.f32 %v214_v40, %v310_v41  ;;  %v500_v48 = vand.u32 2147483647, %v404_v37  ;;  %v216_v50 = vld [vmem:[%s1159_s17 + $0x60] sm:$0xff]  ;;  %v217_v55 = vld [vmem:[%s1159_s17 + $0x68] sm:$0xff]  ;;  %p923_p9 = scmp.lt.s32.totalorder %s699_s8, %s921_s24  ;;  %p924_p13 = scmp.lt.s32.totalorder %s922_s13, %s916_s26 }
  0x57   : > { %v590_v34 = vadd.f32 %v589_v29, %v495_v23  ;;  %v312_v51 = vld [vmem:[%s1166_s29 + $0x60] sm:$0xff]  ;;  %v407_v52 = vsub.f32 %v215_v45, %v311_v46  ;;  %v313_v56 = vld [vmem:[%s1166_s29 + $0x68] sm:$0xff]  ;;  %v218_v60 = vld [vmem:[%s1159_s17 + $0x70] sm:$0xff] }
  0x58   : > { %v501_v53 = vand.u32 2147483647, %v405_v42  ;;  %v408_v57 = vsub.f32 %v216_v50, %v312_v51  ;;  %v502_v58 = vand.u32 2147483647, %v406_v47  ;;  %v314_v61 = vld [vmem:[%s1166_s29 + $0x70] sm:$0xff]  ;;  %v409_v62 = vsub.f32 %v217_v55, %v313_v56  ;;  %v219_v1 = vld [vmem:[%s1159_s17 + $0x78] sm:$0xff]  ;;  %p925_p1 = por %p924_p13, %p923_p9 }
  0x59   : > { %v591_v39 = vadd.f32 %v590_v34, %v496_v28  ;;  %v503_v63 = vand.u32 2147483647, %v407_v52  ;;  %v315_v2 = vld [vmem:[%s1166_s29 + $0x78] sm:$0xff]  ;;  %v410_v3 = vsub.f32 %v218_v60, %v314_v61  ;;  %v220_v6 = vld [vmem:[%s1159_s17 + $0x80] sm:$0xff]  ;;  %v221_v11 = vld [vmem:[%s1159_s17 + $0x88] sm:$0xff] }
  0x5a   : > { %v504_v4 = vand.u32 2147483647, %v408_v57  ;;  %v316_v7 = vld [vmem:[%s1166_s29 + $0x80] sm:$0xff]  ;;  %v411_v8 = vsub.f32 %v219_v1, %v315_v2  ;;  %v505_v9 = vand.u32 2147483647, %v409_v62  ;;  %v317_v12 = vld [vmem:[%s1166_s29 + $0x88] sm:$0xff]  ;;  %p926_p3 = pnand %p925_p1, %p919_p7 }
  0x5b   : > { %v592_v44 = vadd.f32 %v591_v39, %v497_v33  ;;  %v412_v13 = vsub.f32 %v220_v6, %v316_v7  ;;  %v506_v14 = vand.u32 2147483647, %v410_v3  ;;  %v222_v16 = vld [vmem:[%s1159_s17 + $0x90] sm:$0xff]  ;;  %v413_v18 = vsub.f32 %v221_v11, %v317_v12  ;;  %v223_v21 = vld [vmem:[%s1159_s17 + $0x98] sm:$0xff]  ;;  %v224_v26 = vld [vmem:[%s1159_s17 + $0xa0] sm:$0xff] }
  0x5c   : > { %v318_v17 = vld [vmem:[%s1166_s29 + $0x90] sm:$0xff]  ;;  %v507_v19 = vand.u32 2147483647, %v411_v8  ;;  %v319_v22 = vld [vmem:[%s1166_s29 + $0x98] sm:$0xff]  ;;  %v320_v27 = vld [vmem:[%s1166_s29 + $0xa0] sm:$0xff] }
  0x5d   : > { %v593_v49 = vadd.f32 %v592_v44, %v498_v38  ;;  %v414_v23 = vsub.f32 %v222_v16, %v318_v17  ;;  %v508_v24 = vand.u32 2147483647, %v412_v13  ;;  %v415_v28 = vsub.f32 %v223_v21, %v319_v22  ;;  %v225_v31 = vld [vmem:[%s1159_s17 + $0xa8] sm:$0xff]  ;;  %v226_v36 = vld [vmem:[%s1159_s17 + $0xb0] sm:$0xff]  ;;  %v227_v41 = vld [vmem:[%s1159_s17 + $0xb8] sm:$0xff] }
  0x5e   : > { %v509_v29 = vand.u32 2147483647, %v413_v18  ;;  %v321_v32 = vld [vmem:[%s1166_s29 + $0xa8] sm:$0xff]  ;;  %v416_v33 = vsub.f32 %v224_v26, %v320_v27  ;;  %v322_v37 = vld [vmem:[%s1166_s29 + $0xb0] sm:$0xff]  ;;  %v323_v42 = vld [vmem:[%s1166_s29 + $0xb8] sm:$0xff] }
  0x5f   : > { %v594_v54 = vadd.f32 %v593_v49, %v499_v43  ;;  %v510_v34 = vand.u32 2147483647, %v414_v23  ;;  %v417_v38 = vsub.f32 %v225_v31, %v321_v32  ;;  %v511_v39 = vand.u32 2147483647, %v415_v28  ;;  %v228_v46 = vld [vmem:[%s1159_s17 + $0xc0] sm:$0xff]  ;;  %v229_v51 = vld [vmem:[%s1159_s17 + $0xc8] sm:$0xff] }
  0x60   : > { %v418_v43 = vsub.f32 %v226_v36, %v322_v37  ;;  %v512_v44 = vand.u32 2147483647, %v416_v33  ;;  %v324_v47 = vld [vmem:[%s1166_s29 + $0xc0] sm:$0xff]  ;;  %v325_v52 = vld [vmem:[%s1166_s29 + $0xc8] sm:$0xff]  ;;  %v230_v56 = vld [vmem:[%s1159_s17 + $0xd0] sm:$0xff] }
  0x61   : > { %v595_v59 = vadd.f32 %v594_v54, %v500_v48  ;;  %v419_v48 = vsub.f32 %v227_v41, %v323_v42  ;;  %v513_v49 = vand.u32 2147483647, %v417_v38  ;;  %v326_v57 = vld [vmem:[%s1166_s29 + $0xd0] sm:$0xff]  ;;  %v231_v61 = vld [vmem:[%s1159_s17 + $0xd8] sm:$0xff]  ;;  %v232_v2 = vld [vmem:[%s1159_s17 + $0xe0] sm:$0xff] }
  0x62   : > { %v514_v54 = vand.u32 2147483647, %v418_v43  ;;  %v327_v62 = vld [vmem:[%s1166_s29 + $0xd8] sm:$0xff]  ;;  %v328_v3 = vld [vmem:[%s1166_s29 + $0xe0] sm:$0xff]  ;;  %v233_v7 = vld [vmem:[%s1159_s17 + $0xe8] sm:$0xff] }
  0x63   : > { %v596_v0 = vadd.f32 %v595_v59, %v501_v53  ;;  %v420_v53 = vsub.f32 %v228_v46, %v324_v47  ;;  %v515_v59 = vand.u32 2147483647, %v419_v48  ;;  %v329_v8 = vld [vmem:[%s1166_s29 + $0xe8] sm:$0xff]  ;;  %v234_v12 = vld [vmem:[%s1159_s17 + $0xf0] sm:$0xff]  ;;  %v235_v17 = vld [vmem:[%s1159_s17 + $0xf8] sm:$0xff] }
  0x64   : > { %v330_v13 = vld [vmem:[%s1166_s29 + $0xf0] sm:$0xff]  ;;  %v331_v18 = vld [vmem:[%s1166_s29 + $0xf8] sm:$0xff]  ;;  %v236_v22 = vld [vmem:[%s1159_s17 + $0x100] sm:$0xff] }
  0x65   : > { %v597_v5 = vadd.f32 %v596_v0, %v502_v58  ;;  %v421_v58 = vsub.f32 %v229_v51, %v325_v52  ;;  %v516_v0 = vand.u32 2147483647, %v420_v53  ;;  %v332_v23 = vld [vmem:[%s1166_s29 + $0x100] sm:$0xff]  ;;  %v237_v27 = vld [vmem:[%s1159_s17 + $0x108] sm:$0xff]  ;;  %v238_v32 = vld [vmem:[%s1159_s17 + $0x110] sm:$0xff] }
  0x66   : > { %v333_v28 = vld [vmem:[%s1166_s29 + $0x108] sm:$0xff]  ;;  %v334_v33 = vld [vmem:[%s1166_s29 + $0x110] sm:$0xff]  ;;  %v239_v37 = vld [vmem:[%s1159_s17 + $0x118] sm:$0xff] }
  0x67   : > { %v598_v10 = vadd.f32 %v597_v5, %v503_v63  ;;  %v422_v63 = vsub.f32 %v230_v56, %v326_v57  ;;  %v517_v5 = vand.u32 2147483647, %v421_v58  ;;  %v335_v38 = vld [vmem:[%s1166_s29 + $0x118] sm:$0xff]  ;;  %v240_v42 = vld [vmem:[%s1159_s17 + $0x120] sm:$0xff]  ;;  %v241_v47 = vld [vmem:[%s1159_s17 + $0x128] sm:$0xff] }
  0x68   : > { %v336_v43 = vld [vmem:[%s1166_s29 + $0x120] sm:$0xff]  ;;  %v337_v48 = vld [vmem:[%s1166_s29 + $0x128] sm:$0xff]  ;;  %v242_v52 = vld [vmem:[%s1159_s17 + $0x130] sm:$0xff] }
  0x69   : > { %v599_v15 = vadd.f32 %v598_v10, %v504_v4  ;;  %v423_v4 = vsub.f32 %v231_v61, %v327_v62  ;;  %v518_v10 = vand.u32 2147483647, %v422_v63  ;;  %v338_v53 = vld [vmem:[%s1166_s29 + $0x130] sm:$0xff]  ;;  %v243_v57 = vld [vmem:[%s1159_s17 + $0x138] sm:$0xff]  ;;  %v244_v62 = vld [vmem:[%s1159_s17 + $0x140] sm:$0xff] }
  0x6a   : > { %v339_v58 = vld [vmem:[%s1166_s29 + $0x138] sm:$0xff]  ;;  %v340_v63 = vld [vmem:[%s1166_s29 + $0x140] sm:$0xff] }
  0x6b   : > { %v600_v20 = vadd.f32 %v599_v15, %v505_v9  ;;  %v424_v9 = vsub.f32 %v232_v2, %v328_v3  ;;  %v519_v15 = vand.u32 2147483647, %v423_v4  ;;  %v245_v3 = vld [vmem:[%s1159_s17 + $0x148] sm:$0xff] }
  0x6c   : > { %v341_v4 = vld [vmem:[%s1166_s29 + $0x148] sm:$0xff] }
  0x6d   : > { %v601_v25 = vadd.f32 %v600_v20, %v506_v14  ;;  %v425_v14 = vsub.f32 %v233_v7, %v329_v8  ;;  %v520_v20 = vand.u32 2147483647, %v424_v9  ;;  %v246_v8 = vld [vmem:[%s1159_s17 + $0x150] sm:$0xff] }
  0x6e   : > { %v342_v9 = vld [vmem:[%s1166_s29 + $0x150] sm:$0xff] }
  0x6f   : > { %v602_v30 = vadd.f32 %v601_v25, %v507_v19  ;;  %v426_v19 = vsub.f32 %v234_v12, %v330_v13  ;;  %v521_v25 = vand.u32 2147483647, %v425_v14  ;;  %v247_v13 = vld [vmem:[%s1159_s17 + $0x158] sm:$0xff] }
  0x70   : > { %v343_v14 = vld [vmem:[%s1166_s29 + $0x158] sm:$0xff] }
  0x71   : > { %v603_v35 = vadd.f32 %v602_v30, %v508_v24  ;;  %v427_v24 = vsub.f32 %v235_v17, %v331_v18  ;;  %v522_v30 = vand.u32 2147483647, %v426_v19  ;;  %v248_v18 = vld [vmem:[%s1159_s17 + $0x160] sm:$0xff] }
  0x72   : > { %v344_v19 = vld [vmem:[%s1166_s29 + $0x160] sm:$0xff] }
  0x73   : > { %v604_v40 = vadd.f32 %v603_v35, %v509_v29  ;;  %v428_v29 = vsub.f32 %v236_v22, %v332_v23  ;;  %v523_v35 = vand.u32 2147483647, %v427_v24  ;;  %v249_v23 = vld [vmem:[%s1159_s17 + $0x168] sm:$0xff] }
  0x74   : > { %v345_v24 = vld [vmem:[%s1166_s29 + $0x168] sm:$0xff] }
  0x75   : > { %v605_v45 = vadd.f32 %v604_v40, %v510_v34  ;;  %v429_v34 = vsub.f32 %v237_v27, %v333_v28  ;;  %v524_v40 = vand.u32 2147483647, %v428_v29  ;;  %v250_v28 = vld [vmem:[%s1159_s17 + $0x170] sm:$0xff] }
  0x76   : > { %v346_v29 = vld [vmem:[%s1166_s29 + $0x170] sm:$0xff] }
  0x77   : > { %v606_v50 = vadd.f32 %v605_v45, %v511_v39  ;;  %v430_v39 = vsub.f32 %v238_v32, %v334_v33  ;;  %v525_v45 = vand.u32 2147483647, %v429_v34  ;;  %v251_v33 = vld [vmem:[%s1159_s17 + $0x178] sm:$0xff] }
  0x78   : > { %v347_v34 = vld [vmem:[%s1166_s29 + $0x178] sm:$0xff] }
  0x79   : > { %v607_v55 = vadd.f32 %v606_v50, %v512_v44  ;;  %v431_v44 = vsub.f32 %v239_v37, %v335_v38  ;;  %v526_v50 = vand.u32 2147483647, %v430_v39  ;;  %v252_v38 = vld [vmem:[%s1159_s17 + $0x180] sm:$0xff] }
  0x7a   : > { %v348_v39 = vld [vmem:[%s1166_s29 + $0x180] sm:$0xff] }
  0x7b   : > { %v608_v60 = vadd.f32 %v607_v55, %v513_v49  ;;  %v432_v49 = vsub.f32 %v240_v42, %v336_v43  ;;  %v527_v55 = vand.u32 2147483647, %v431_v44  ;;  %v253_v43 = vld [vmem:[%s1159_s17 + $0x188] sm:$0xff] }
  0x7c   : > { %v349_v44 = vld [vmem:[%s1166_s29 + $0x188] sm:$0xff] }
  0x7d   : > { %v609_v1 = vadd.f32 %v608_v60, %v514_v54  ;;  %v433_v54 = vsub.f32 %v241_v47, %v337_v48  ;;  %v528_v60 = vand.u32 2147483647, %v432_v49  ;;  %v254_v48 = vld [vmem:[%s1159_s17 + $0x190] sm:$0xff] }
  0x7e   : > { %v350_v49 = vld [vmem:[%s1166_s29 + $0x190] sm:$0xff] }
  0x7f   : > { %v610_v6 = vadd.f32 %v609_v1, %v515_v59  ;;  %v434_v59 = vsub.f32 %v242_v52, %v338_v53  ;;  %v529_v1 = vand.u32 2147483647, %v433_v54  ;;  %v255_v53 = vld [vmem:[%s1159_s17 + $0x198] sm:$0xff] }
  0x80   : > { %v351_v54 = vld [vmem:[%s1166_s29 + $0x198] sm:$0xff] }
  0x81   : > { %v611_v11 = vadd.f32 %v610_v6, %v516_v0  ;;  %v435_v0 = vsub.f32 %v243_v57, %v339_v58  ;;  %v530_v6 = vand.u32 2147483647, %v434_v59  ;;  %v256_v58 = vld [vmem:[%s1159_s17 + $0x1a0] sm:$0xff] }
  0x82   : > { %v352_v59 = vld [vmem:[%s1166_s29 + $0x1a0] sm:$0xff] }
  0x83   : > { %v612_v16 = vadd.f32 %v611_v11, %v517_v5  ;;  %v436_v5 = vsub.f32 %v244_v62, %v340_v63  ;;  %v531_v11 = vand.u32 2147483647, %v435_v0  ;;  %v257_v63 = vld [vmem:[%s1159_s17 + $0x1a8] sm:$0xff] }
  0x84   : > { %v353_v0 = vld [vmem:[%s1166_s29 + $0x1a8] sm:$0xff] }
  0x85   : > { %v613_v21 = vadd.f32 %v612_v16, %v518_v10  ;;  %v437_v10 = vsub.f32 %v245_v3, %v341_v4  ;;  %v532_v16 = vand.u32 2147483647, %v436_v5  ;;  %v258_v4 = vld [vmem:[%s1159_s17 + $0x1b0] sm:$0xff] }
  0x86   : > { %v354_v5 = vld [vmem:[%s1166_s29 + $0x1b0] sm:$0xff] }
  0x87   : > { %v614_v26 = vadd.f32 %v613_v21, %v519_v15  ;;  %v438_v15 = vsub.f32 %v246_v8, %v342_v9  ;;  %v533_v21 = vand.u32 2147483647, %v437_v10  ;;  %v259_v9 = vld [vmem:[%s1159_s17 + $0x1b8] sm:$0xff] }
  0x88   : > { %v355_v10 = vld [vmem:[%s1166_s29 + $0x1b8] sm:$0xff] }
  0x89   : > { %v615_v31 = vadd.f32 %v614_v26, %v520_v20  ;;  %v439_v20 = vsub.f32 %v247_v13, %v343_v14  ;;  %v534_v26 = vand.u32 2147483647, %v438_v15  ;;  %v260_v14 = vld [vmem:[%s1159_s17 + $0x1c0] sm:$0xff] }
  0x8a   : > { %v356_v15 = vld [vmem:[%s1166_s29 + $0x1c0] sm:$0xff] }
  0x8b   : > { %v616_v36 = vadd.f32 %v615_v31, %v521_v25  ;;  %v440_v25 = vsub.f32 %v248_v18, %v344_v19  ;;  %v535_v31 = vand.u32 2147483647, %v439_v20  ;;  %v261_v19 = vld [vmem:[%s1159_s17 + $0x1c8] sm:$0xff] }
  0x8c   : > { %v357_v20 = vld [vmem:[%s1166_s29 + $0x1c8] sm:$0xff] }
  0x8d   : > { %v617_v41 = vadd.f32 %v616_v36, %v522_v30  ;;  %v441_v30 = vsub.f32 %v249_v23, %v345_v24  ;;  %v536_v36 = vand.u32 2147483647, %v440_v25  ;;  %v262_v24 = vld [vmem:[%s1159_s17 + $0x1d0] sm:$0xff] }
  0x8e   : > { %v358_v25 = vld [vmem:[%s1166_s29 + $0x1d0] sm:$0xff] }
  0x8f   : > { %v618_v46 = vadd.f32 %v617_v41, %v523_v35  ;;  %v442_v35 = vsub.f32 %v250_v28, %v346_v29  ;;  %v537_v41 = vand.u32 2147483647, %v441_v30  ;;  %v263_v29 = vld [vmem:[%s1159_s17 + $0x1d8] sm:$0xff] }
  0x90   : > { %v359_v30 = vld [vmem:[%s1166_s29 + $0x1d8] sm:$0xff] }
  0x91   : > { %v619_v51 = vadd.f32 %v618_v46, %v524_v40  ;;  %v443_v40 = vsub.f32 %v251_v33, %v347_v34  ;;  %v538_v46 = vand.u32 2147483647, %v442_v35  ;;  %v264_v34 = vld [vmem:[%s1159_s17 + $0x1e0] sm:$0xff] }
  0x92   : > { %v360_v35 = vld [vmem:[%s1166_s29 + $0x1e0] sm:$0xff] }
  0x93   : > { %v620_v56 = vadd.f32 %v619_v51, %v525_v45  ;;  %v444_v45 = vsub.f32 %v252_v38, %v348_v39  ;;  %v539_v51 = vand.u32 2147483647, %v443_v40  ;;  %v265_v39 = vld [vmem:[%s1159_s17 + $0x1e8] sm:$0xff] }
  0x94   : > { %v361_v40 = vld [vmem:[%s1166_s29 + $0x1e8] sm:$0xff] }
  0x95   : > { %v621_v61 = vadd.f32 %v620_v56, %v526_v50  ;;  %v445_v50 = vsub.f32 %v253_v43, %v349_v44  ;;  %v540_v56 = vand.u32 2147483647, %v444_v45  ;;  %v266_v44 = vld [vmem:[%s1159_s17 + $0x1f0] sm:$0xff] }
  0x96   : > { %v362_v45 = vld [vmem:[%s1166_s29 + $0x1f0] sm:$0xff] }
  0x97   : > { %v622_v2 = vadd.f32 %v621_v61, %v527_v55  ;;  %v446_v55 = vsub.f32 %v254_v48, %v350_v49  ;;  %v541_v61 = vand.u32 2147483647, %v445_v50  ;;  %v267_v49 = vld [vmem:[%s1159_s17 + $0x1f8] sm:$0xff] }
  0x98   : > { %v363_v50 = vld [vmem:[%s1166_s29 + $0x1f8] sm:$0xff] }
  0x99   : > { %v623_v7 = vadd.f32 %v622_v2, %v528_v60  ;;  %v447_v60 = vsub.f32 %v255_v53, %v351_v54  ;;  %v542_v2 = vand.u32 2147483647, %v446_v55  ;;  %v268_v54 = vld [vmem:[%s1159_s17 + $0x200] sm:$0xff] }
  0x9a   : > { %v364_v55 = vld [vmem:[%s1166_s29 + $0x200] sm:$0xff] }
  0x9b   : > { %v624_v12 = vadd.f32 %v623_v7, %v529_v1  ;;  %v448_v1 = vsub.f32 %v256_v58, %v352_v59  ;;  %v543_v7 = vand.u32 2147483647, %v447_v60  ;;  %v269_v59 = vld [vmem:[%s1159_s17 + $0x208] sm:$0xff] }
  0x9c   : > { %v365_v60 = vld [vmem:[%s1166_s29 + $0x208] sm:$0xff] }
  0x9d   : > { %v625_v17 = vadd.f32 %v624_v12, %v530_v6  ;;  %v449_v6 = vsub.f32 %v257_v63, %v353_v0  ;;  %v544_v12 = vand.u32 2147483647, %v448_v1  ;;  %v270_v0 = vld [vmem:[%s1159_s17 + $0x210] sm:$0xff] }
  0x9e   : > { %v366_v1 = vld [vmem:[%s1166_s29 + $0x210] sm:$0xff] }
  0x9f   : > { %v626_v22 = vadd.f32 %v625_v17, %v531_v11  ;;  %v450_v11 = vsub.f32 %v258_v4, %v354_v5  ;;  %v545_v17 = vand.u32 2147483647, %v449_v6  ;;  %v271_v5 = vld [vmem:[%s1159_s17 + $0x218] sm:$0xff] }
  0xa0   : > { %v367_v6 = vld [vmem:[%s1166_s29 + $0x218] sm:$0xff] }
  0xa1   : > { %v627_v27 = vadd.f32 %v626_v22, %v532_v16  ;;  %v451_v16 = vsub.f32 %v259_v9, %v355_v10  ;;  %v546_v22 = vand.u32 2147483647, %v450_v11  ;;  %v272_v10 = vld [vmem:[%s1159_s17 + $0x220] sm:$0xff] }
  0xa2   : > { %v368_v11 = vld [vmem:[%s1166_s29 + $0x220] sm:$0xff] }
  0xa3   : > { %v628_v32 = vadd.f32 %v627_v27, %v533_v21  ;;  %v452_v21 = vsub.f32 %v260_v14, %v356_v15  ;;  %v547_v27 = vand.u32 2147483647, %v451_v16  ;;  %v273_v15 = vld [vmem:[%s1159_s17 + $0x228] sm:$0xff] }
  0xa4   : > { %v369_v16 = vld [vmem:[%s1166_s29 + $0x228] sm:$0xff] }
  0xa5   : > { %v629_v37 = vadd.f32 %v628_v32, %v534_v26  ;;  %v453_v26 = vsub.f32 %v261_v19, %v357_v20  ;;  %v548_v32 = vand.u32 2147483647, %v452_v21  ;;  %v274_v20 = vld [vmem:[%s1159_s17 + $0x230] sm:$0xff] }
  0xa6   : > { %v370_v21 = vld [vmem:[%s1166_s29 + $0x230] sm:$0xff] }
  0xa7   : > { %v630_v42 = vadd.f32 %v629_v37, %v535_v31  ;;  %v454_v31 = vsub.f32 %v262_v24, %v358_v25  ;;  %v549_v37 = vand.u32 2147483647, %v453_v26  ;;  %v275_v25 = vld [vmem:[%s1159_s17 + $0x238] sm:$0xff] }
  0xa8   : > { %v371_v26 = vld [vmem:[%s1166_s29 + $0x238] sm:$0xff] }
  0xa9   : > { %v631_v47 = vadd.f32 %v630_v42, %v536_v36  ;;  %v455_v36 = vsub.f32 %v263_v29, %v359_v30  ;;  %v550_v42 = vand.u32 2147483647, %v454_v31  ;;  %v276_v30 = vld [vmem:[%s1159_s17 + $0x240] sm:$0xff] }
  0xaa   : > { %v372_v31 = vld [vmem:[%s1166_s29 + $0x240] sm:$0xff] }
  0xab   : > { %v632_v52 = vadd.f32 %v631_v47, %v537_v41  ;;  %v456_v41 = vsub.f32 %v264_v34, %v360_v35  ;;  %v551_v47 = vand.u32 2147483647, %v455_v36  ;;  %v277_v35 = vld [vmem:[%s1159_s17 + $0x248] sm:$0xff] }
  0xac   : > { %v373_v36 = vld [vmem:[%s1166_s29 + $0x248] sm:$0xff] }
  0xad   : > { %v633_v57 = vadd.f32 %v632_v52, %v538_v46  ;;  %v457_v46 = vsub.f32 %v265_v39, %v361_v40  ;;  %v552_v52 = vand.u32 2147483647, %v456_v41  ;;  %v278_v40 = vld [vmem:[%s1159_s17 + $0x250] sm:$0xff] }
  0xae   : > { %v374_v41 = vld [vmem:[%s1166_s29 + $0x250] sm:$0xff] }
  0xaf   : > { %v634_v62 = vadd.f32 %v633_v57, %v539_v51  ;;  %v458_v51 = vsub.f32 %v266_v44, %v362_v45  ;;  %v553_v57 = vand.u32 2147483647, %v457_v46  ;;  %v279_v45 = vld [vmem:[%s1159_s17 + $0x258] sm:$0xff] }
  0xb0   : > { %v375_v46 = vld [vmem:[%s1166_s29 + $0x258] sm:$0xff] }
  0xb1   : > { %v635_v3 = vadd.f32 %v634_v62, %v540_v56  ;;  %v459_v56 = vsub.f32 %v267_v49, %v363_v50  ;;  %v554_v62 = vand.u32 2147483647, %v458_v51  ;;  %v280_v50 = vld [vmem:[%s1159_s17 + $0x260] sm:$0xff] }
  0xb2   : > { %v376_v51 = vld [vmem:[%s1166_s29 + $0x260] sm:$0xff] }
  0xb3   : > { %v636_v8 = vadd.f32 %v635_v3, %v541_v61  ;;  %v460_v61 = vsub.f32 %v268_v54, %v364_v55  ;;  %v555_v3 = vand.u32 2147483647, %v459_v56  ;;  %v281_v55 = vld [vmem:[%s1159_s17 + $0x268] sm:$0xff] }
  0xb4   : > { %v377_v56 = vld [vmem:[%s1166_s29 + $0x268] sm:$0xff] }
  0xb5   : > { %v637_v13 = vadd.f32 %v636_v8, %v542_v2  ;;  %v461_v2 = vsub.f32 %v269_v59, %v365_v60  ;;  %v556_v8 = vand.u32 2147483647, %v460_v61  ;;  %v282_v60 = vld [vmem:[%s1159_s17 + $0x270] sm:$0xff] }
  0xb6   : > { %v378_v61 = vld [vmem:[%s1166_s29 + $0x270] sm:$0xff] }
  0xb7   : > { %v638_v18 = vadd.f32 %v637_v13, %v543_v7  ;;  %v462_v7 = vsub.f32 %v270_v0, %v366_v1  ;;  %v557_v13 = vand.u32 2147483647, %v461_v2  ;;  %v283_v1 = vld [vmem:[%s1159_s17 + $0x278] sm:$0xff] }
  0xb8   : > { %v379_v2 = vld [vmem:[%s1166_s29 + $0x278] sm:$0xff] }
  0xb9   : > { %v639_v23 = vadd.f32 %v638_v18, %v544_v12  ;;  %v463_v12 = vsub.f32 %v271_v5, %v367_v6  ;;  %v558_v18 = vand.u32 2147483647, %v462_v7  ;;  %v284_v6 = vld [vmem:[%s1159_s17 + $0x280] sm:$0xff] }
  0xba   : > { %v380_v7 = vld [vmem:[%s1166_s29 + $0x280] sm:$0xff] }
  0xbb   : > { %v640_v28 = vadd.f32 %v639_v23, %v545_v17  ;;  %v464_v17 = vsub.f32 %v272_v10, %v368_v11  ;;  %v559_v23 = vand.u32 2147483647, %v463_v12  ;;  %v285_v11 = vld [vmem:[%s1159_s17 + $0x288] sm:$0xff] }
  0xbc   : > { %v381_v12 = vld [vmem:[%s1166_s29 + $0x288] sm:$0xff] }
  0xbd   : > { %v641_v33 = vadd.f32 %v640_v28, %v546_v22  ;;  %v465_v22 = vsub.f32 %v273_v15, %v369_v16  ;;  %v560_v28 = vand.u32 2147483647, %v464_v17  ;;  %v286_v16 = vld [vmem:[%s1159_s17 + $0x290] sm:$0xff] }
  0xbe   : > { %v382_v17 = vld [vmem:[%s1166_s29 + $0x290] sm:$0xff] }
  0xbf   : > { %v642_v38 = vadd.f32 %v641_v33, %v547_v27  ;;  %v466_v27 = vsub.f32 %v274_v20, %v370_v21  ;;  %v561_v33 = vand.u32 2147483647, %v465_v22  ;;  %v287_v21 = vld [vmem:[%s1159_s17 + $0x298] sm:$0xff] }
  0xc0   : > { %v383_v22 = vld [vmem:[%s1166_s29 + $0x298] sm:$0xff] }
  0xc1   : > { %v643_v43 = vadd.f32 %v642_v38, %v548_v32  ;;  %v467_v32 = vsub.f32 %v275_v25, %v371_v26  ;;  %v562_v38 = vand.u32 2147483647, %v466_v27  ;;  %v288_v26 = vld [vmem:[%s1159_s17 + $0x2a0] sm:$0xff] }
  0xc2   : > { %v384_v27 = vld [vmem:[%s1166_s29 + $0x2a0] sm:$0xff] }
  0xc3   : > { %v644_v48 = vadd.f32 %v643_v43, %v549_v37  ;;  %v468_v37 = vsub.f32 %v276_v30, %v372_v31  ;;  %v563_v43 = vand.u32 2147483647, %v467_v32  ;;  %v289_v31 = vld [vmem:[%s1159_s17 + $0x2a8] sm:$0xff] }
  0xc4   : > { %v385_v32 = vld [vmem:[%s1166_s29 + $0x2a8] sm:$0xff] }
  0xc5   : > { %v645_v53 = vadd.f32 %v644_v48, %v550_v42  ;;  %v469_v42 = vsub.f32 %v277_v35, %v373_v36  ;;  %v564_v48 = vand.u32 2147483647, %v468_v37  ;;  %v290_v36 = vld [vmem:[%s1159_s17 + $0x2b0] sm:$0xff] }
  0xc6   : > { %v386_v37 = vld [vmem:[%s1166_s29 + $0x2b0] sm:$0xff] }
  0xc7   : > { %v646_v58 = vadd.f32 %v645_v53, %v551_v47  ;;  %v470_v47 = vsub.f32 %v278_v40, %v374_v41  ;;  %v565_v53 = vand.u32 2147483647, %v469_v42  ;;  %v291_v41 = vld [vmem:[%s1159_s17 + $0x2b8] sm:$0xff] }
  0xc8   : > { %v387_v42 = vld [vmem:[%s1166_s29 + $0x2b8] sm:$0xff] }
  0xc9   : > { %v647_v63 = vadd.f32 %v646_v58, %v552_v52  ;;  %v471_v52 = vsub.f32 %v279_v45, %v375_v46  ;;  %v566_v58 = vand.u32 2147483647, %v470_v47  ;;  %v292_v46 = vld [vmem:[%s1159_s17 + $0x2c0] sm:$0xff] }
  0xca   : > { %v388_v47 = vld [vmem:[%s1166_s29 + $0x2c0] sm:$0xff] }
  0xcb   : > { %v648_v4 = vadd.f32 %v647_v63, %v553_v57  ;;  %v472_v57 = vsub.f32 %v280_v50, %v376_v51  ;;  %v567_v63 = vand.u32 2147483647, %v471_v52  ;;  %v293_v51 = vld [vmem:[%s1159_s17 + $0x2c8] sm:$0xff] }
  0xcc   : > { %v389_v52 = vld [vmem:[%s1166_s29 + $0x2c8] sm:$0xff] }
  0xcd   : > { %v649_v9 = vadd.f32 %v648_v4, %v554_v62  ;;  %v473_v62 = vsub.f32 %v281_v55, %v377_v56  ;;  %v568_v4 = vand.u32 2147483647, %v472_v57  ;;  %v294_v56 = vld [vmem:[%s1159_s17 + $0x2d0] sm:$0xff] }
  0xce   : > { %v390_v57 = vld [vmem:[%s1166_s29 + $0x2d0] sm:$0xff] }
  0xcf   : > { %v650_v14 = vadd.f32 %v649_v9, %v555_v3  ;;  %v474_v3 = vsub.f32 %v282_v60, %v378_v61  ;;  %v569_v9 = vand.u32 2147483647, %v473_v62  ;;  %v295_v61 = vld [vmem:[%s1159_s17 + $0x2d8] sm:$0xff] }
  0xd0   : > { %v391_v62 = vld [vmem:[%s1166_s29 + $0x2d8] sm:$0xff] }
  0xd1   : > { %v651_v19 = vadd.f32 %v650_v14, %v556_v8  ;;  %v475_v8 = vsub.f32 %v283_v1, %v379_v2  ;;  %v570_v14 = vand.u32 2147483647, %v474_v3  ;;  %v296_v2 = vld [vmem:[%s1159_s17 + $0x2e0] sm:$0xff] }
  0xd2   : > { %v392_v3 = vld [vmem:[%s1166_s29 + $0x2e0] sm:$0xff] }
  0xd3   : > { %v652_v24 = vadd.f32 %v651_v19, %v557_v13  ;;  %v476_v13 = vsub.f32 %v284_v6, %v380_v7  ;;  %v571_v19 = vand.u32 2147483647, %v475_v8  ;;  %v297_v7 = vld [vmem:[%s1159_s17 + $0x2e8] sm:$0xff] }
  0xd4   : > { %v393_v8 = vld [vmem:[%s1166_s29 + $0x2e8] sm:$0xff] }
  0xd5   : > { %v653_v29 = vadd.f32 %v652_v24, %v558_v18  ;;  %v477_v18 = vsub.f32 %v285_v11, %v381_v12  ;;  %v572_v24 = vand.u32 2147483647, %v476_v13  ;;  %v298_v12 = vld [vmem:[%s1159_s17 + $0x2f0] sm:$0xff] }
  0xd6   : > { %v394_v13 = vld [vmem:[%s1166_s29 + $0x2f0] sm:$0xff] }
  0xd7   : > { %v654_v34 = vadd.f32 %v653_v29, %v559_v23  ;;  %v478_v23 = vsub.f32 %v286_v16, %v382_v17  ;;  %v573_v29 = vand.u32 2147483647, %v477_v18  ;;  %v299_v17 = vld [vmem:[%s1159_s17 + $0x2f8] sm:$0xff] }
  0xd8   : > { %v395_v18 = vld [vmem:[%s1166_s29 + $0x2f8] sm:$0xff] }
  0xd9   : > { %v655_v39 = vadd.f32 %v654_v34, %v560_v28  ;;  %v479_v28 = vsub.f32 %v287_v21, %v383_v22  ;;  %v574_v34 = vand.u32 2147483647, %v478_v23  ;;  %v491_v22 = vsub.f32 %v299_v17, %v395_v18 }
  0xdb   : > { %v656_v44 = vadd.f32 %v655_v39, %v561_v33  ;;  %v480_v33 = vsub.f32 %v288_v26, %v384_v27  ;;  %v575_v39 = vand.u32 2147483647, %v479_v28  ;;  %v587_v27 = vand.u32 2147483647, %v491_v22 }
  0xdd   : > { %v657_v49 = vadd.f32 %v656_v44, %v562_v38  ;;  %v481_v38 = vsub.f32 %v289_v31, %v385_v32  ;;  %v576_v44 = vand.u32 2147483647, %v480_v33 }
  0xdf   : > { %v658_v54 = vadd.f32 %v657_v49, %v563_v43  ;;  %v482_v43 = vsub.f32 %v290_v36, %v386_v37  ;;  %v577_v49 = vand.u32 2147483647, %v481_v38 }
  0xe1   : > { %v659_v59 = vadd.f32 %v658_v54, %v564_v48  ;;  %v483_v48 = vsub.f32 %v291_v41, %v387_v42  ;;  %v578_v54 = vand.u32 2147483647, %v482_v43 }
  0xe3   : > { %v660_v0 = vadd.f32 %v659_v59, %v565_v53  ;;  %v484_v53 = vsub.f32 %v292_v46, %v388_v47  ;;  %v579_v59 = vand.u32 2147483647, %v483_v48 }
  0xe5   : > { %v661_v5 = vadd.f32 %v660_v0, %v566_v58  ;;  %v485_v58 = vsub.f32 %v293_v51, %v389_v52  ;;  %v580_v0 = vand.u32 2147483647, %v484_v53 }
  0xe7   : > { %v662_v10 = vadd.f32 %v661_v5, %v567_v63  ;;  %v486_v63 = vsub.f32 %v294_v56, %v390_v57  ;;  %v581_v5 = vand.u32 2147483647, %v485_v58 }
  0xe9   : > { %v663_v15 = vadd.f32 %v662_v10, %v568_v4  ;;  %v487_v4 = vsub.f32 %v295_v61, %v391_v62  ;;  %v582_v10 = vand.u32 2147483647, %v486_v63 }
  0xeb   : > { %v664_v20 = vadd.f32 %v663_v15, %v569_v9  ;;  %v488_v9 = vsub.f32 %v296_v2, %v392_v3  ;;  %v583_v15 = vand.u32 2147483647, %v487_v4 }
  0xed   : > { %v665_v25 = vadd.f32 %v664_v20, %v570_v14  ;;  %v489_v14 = vsub.f32 %v297_v7, %v393_v8  ;;  %v584_v20 = vand.u32 2147483647, %v488_v9 }
  0xef   : > { %v666_v30 = vadd.f32 %v665_v25, %v571_v19  ;;  %v490_v19 = vsub.f32 %v298_v12, %v394_v13  ;;  %v585_v23 = vand.u32 2147483647, %v489_v14 }
  0xf1   : > { %v667_v35 = vadd.f32 %v666_v30, %v572_v24  ;;  %v586_v25 = vand.u32 2147483647, %v490_v19 }
  0xf3   : > { %v668_v40 = vadd.f32 %v667_v35, %v573_v29 }
  0xf5   : > { %v669_v45 = vadd.f32 %v668_v40, %v574_v34 }
  0xf7   : > { %v670_v50 = vadd.f32 %v669_v45, %v575_v39 }
  0xf9   : > { %v671_v55 = vadd.f32 %v670_v50, %v576_v44 }
  0xfb   : > { %v672_v60 = vadd.f32 %v671_v55, %v577_v49 }
  0xfd   : > { %v673_v1 = vadd.f32 %v672_v60, %v578_v54 }
  0xff   : > { %v674_v6 = vadd.f32 %v673_v1, %v579_v59 }
 0x101   : > { %v675_v11 = vadd.f32 %v674_v6, %v580_v0 }
 0x103   : > { %v676_v16 = vadd.f32 %v675_v11, %v581_v5 }
 0x105   : > { %v677_v21 = vadd.f32 %v676_v16, %v582_v10 }
 0x107   : > { %v678_v24 = vadd.f32 %v677_v21, %v583_v15 }
 0x109   : > { %v679_v26 = vadd.f32 %v678_v24, %v584_v20 }
 0x10b   : > { %v680_v28 = vadd.f32 %v679_v26, %v585_v23 }
 0x10d   : > { %v681_v29 = vadd.f32 %v680_v28, %v586_v25 }
 0x10f   : > { %v682_v30 = vadd.f32 %v681_v29, %v587_v27 }
 0x111   : > { %683 = vst [vmem:[%s201_s5] sm:$0xff] %v682_v30 }
 0x112   : > { %929 = shalt.err (!%p926_p3)
}
 0x113   : > { %s930_s6 = scalar_lea.hbm %s696_s23, 128  ;;  %s934_s30 = scalar_lea.hbm %s1401_s2, 512 }
 0x114   : > { %p931_p10 = scmp.ne.s32.totalorder %s696_s23, %s930_s6  ;;  %p935_p5 = scmp.lt.s32.totalorder %s696_s23, %s1401_s2 }
 0x115   : > { %p936_p8 = scmp.lt.s32.totalorder %s934_s30, %s930_s6 }
 0x116   : > { %p932_p11 = pnand %p931_p10, %p1410_p0 }
 0x117   : > { %p937_p6 = por %p936_p8, %p935_p5 }
 0x118   : > { %p933_p4 = pneg %p932_p11 }
 0x11a   : > { %p938_p12 = pnand %p937_p6, %p933_p4 }
 0x11c   : > { %941 = shalt.err (!%p938_p12)
}
 0x11d   : > { %811 = dma.vmem_to_hbm [thread:$0]  (%p1410_p0), %s699_s8, 128, %s696_s23, %s685_s25  }
 0x11e PF: > { %p825_p2 = scmp.ge.s32.totalorder %s984_s12, 2  ;;  %s710_s28 = sand.u32 1, %s972_s9  }
 0x11f   : > { %p1411_p7 = scmp.ne.s32.totalorder %s1406_s21, 0  ;;  %s711_s29 = scalar_lea.sflag [#allocation4], %s710_s28 }
 0x121   : > { %p821_p9 = pnand %p825_p2, %p1411_p7 }
 0x123   : > { %p822_p13 = pneg %p821_p9 }
 0x125   : > { %967 = dma.done.wait (%p822_p13), %s711_s29, 128  }
 0x126   : > { %969 = vsyncadd (%p822_p13), %s711_s29, 4294967168  ;;  %p18_p1 = scmp.ge.s32.totalorder %s1031_s15, 6   ;;  %s1412_s9 = smov %s976_s10 }
 0x127   : > { %s1413_s10 = smov %s980_s11  ;;  %s1414_s11 = smov %s1043_s18 }
 0x128   : > { %s1415_s12 = smov %s1031_s15  ;;  %20 = sbr.rel (!%p18_p1) target bundleno = 7 (0x7), region = 86 }
 0x12d   :  { %716 = vsyncpa [#allocation3], 1 }
 0x12e   :  { %718 = vsyncpa [#allocation3 + $0x1], 1 }
 0x12f   :  { %719 = vsyncpa [#allocation6], 1 }
 0x130   :  { %721 = vsyncpa [#allocation6 + $0x1], 1 }
 0x131   :  { %722 = vsyncpa [#allocation4], 1 }
 0x132   :  { %724 = vsyncpa [#allocation4 + $0x1], 1 }

</bundles_post_ra>
